<compile_context>
chip_gen: v6e
topology: v6e:2x2x1
jax: 0.10.0
libtpu: 0.0.40
codegen_flags: <defaults>
</compile_context>

<pallas_src>
import functools

import jax
import jax.numpy as jnp
from jax.experimental import pallas as pl
from jax.experimental.pallas import tpu as pltpu


def gem_kernel(scal_ref, x_ref, o_ref, *, eps):
    # scal_ref: SMEM (2,) f32 -> [p, 1/p]
    # x_ref:    VMEM (TR, H*W) tile of the (N*C, H*W) slab
    # o_ref:    VMEM (TR, 1) pooled output
    p = scal_ref[0]
    inv_p = scal_ref[1]

    x = x_ref[...].astype(jnp.float32)
    xc = jnp.maximum(x, eps)                       # clamp(min=eps) > 0
    xp = jnp.exp(p * jnp.log(xc))                  # xc ** p (traced exponent)
    mean = jnp.mean(xp, axis=-1, keepdims=True)    # avg pool over full H*W
    out = jnp.exp(jnp.log(mean) * inv_p)           # mean ** (1/p) (no divide)

    o_ref[...] = out.astype(o_ref.dtype)


def gem_pallas(x, p, eps=1e-6):
    """x: (N, C, H, W) float array, p: shape-(1,) parameter. Returns (N, C, 1, 1)."""
    N, C, H, W = x.shape
    rows, cols = N * C, H * W
    x2 = x.reshape(rows, cols)

    # Row-tile sizing: keep double-buffered input blocks <= ~8 MiB so the
    # default scoped VMEM limit is safe on v5e (16 MiB) / v6e / v7x (32 MiB),
    # while staying big enough to amortize per-grid-step overhead.
    itemsize = x2.dtype.itemsize
    vmem_budget = 8 * 1024 * 1024
    tr = vmem_budget // (2 * cols * itemsize)
    tr = max(8, min(1024, (tr // 8) * 8))          # multiple of 8 sublanes
    rows8 = pl.cdiv(rows, 8) * 8
    TR = min(tr, rows8)

    # Pad rows to a multiple of TR (pad value 1.0 keeps log/exp well-defined).
    rows_p = pl.cdiv(rows, TR) * TR
    if rows_p != rows:
        x2 = jnp.pad(x2, ((0, rows_p - rows), (0, 0)), constant_values=1.0)

    pv = jnp.asarray(p, jnp.float32).reshape(())
    scal = jnp.stack([pv, 1.0 / pv])               # [p, 1/p] for SMEM

    out = pl.pallas_call(
        functools.partial(gem_kernel, eps=float(eps)),
        out_shape=jax.ShapeDtypeStruct((rows_p, 1), x.dtype),
        grid=(rows_p // TR,),
        in_specs=[
            pl.BlockSpec(memory_space=pltpu.MemorySpace.SMEM),   # [p, 1/p]
            pl.BlockSpec((TR, cols), lambda i: (i, 0)),          # row tile
        ],
        out_specs=pl.BlockSpec((TR, 1), lambda i: (i, 0)),
        compiler_params=pltpu.CompilerParams(
            dimension_semantics=("parallel",),
        ),
    )(scal, x2)

    return out[:rows].reshape(N, C, 1, 1)


def gem_ref(x, p, eps=1e-6):
    """Pure-JAX reference matching the PyTorch semantics."""
    pv = jnp.asarray(p, jnp.float32).reshape(())
    xc = jnp.maximum(x, eps)
    return jnp.mean(xc ** pv, axis=(-2, -1), keepdims=True) ** (1.0 / pv)


if __name__ == "__main__":
    key = jax.random.PRNGKey(0)
    N, C, H, W = 2, 4, 16, 16
    x = jax.random.normal(key, (N, C, H, W), dtype=jnp.float32)

    # Deterministic parameter init, matching GeM.__init__: p = ones(1) * 3
    p = jnp.ones((1,), dtype=jnp.float32) * 3.0

    out = gem_pallas(x, p)
    jax.block_until_ready(out)

    ref = gem_ref(x, p)
    assert out.shape == (N, C, 1, 1)
    assert jnp.allclose(out, ref, rtol=1e-4, atol=1e-5)

    print("KERNEL_OK")
</pallas_src>

<mosaic_0001>
module attributes {stable_mosaic.version = 11 : i64} {
  func.func @gem_kernel(%arg0: i32, %arg1: memref<2xf32, #tpu.memory_space<smem>>, %arg2: memref<8x256xf32, #tpu.memory_space<vmem>>, %arg3: memref<8x1xf32, #tpu.memory_space<vmem>>) attributes {dimension_semantics = [#tpu.dimension_semantics<parallel>], iteration_bounds = array<i64: 1>, scalar_prefetch = 0 : i64, scratch_operands = 0 : i64, tpu.core_type = #tpu.core_type<tc>, window_params = [{transform_indices = @transform_0, window_bounds = array<i64: 2>}, {transform_indices = @transform_1, window_bounds = array<i64: 8, 256>}, {transform_indices = @transform_2, window_bounds = array<i64: 8, 1>}]} {
    %c0 = arith.constant 0 : index
    %0 = memref.load %arg1[%c0] : memref<2xf32, #tpu.memory_space<smem>>
    %c1 = arith.constant 1 : index
    %1 = memref.load %arg1[%c1] : memref<2xf32, #tpu.memory_space<smem>>
    %c0_0 = arith.constant 0 : index
    %c0_1 = arith.constant 0 : index
    %2 = vector.load %arg2[%c0_0, %c0_1] : memref<8x256xf32, #tpu.memory_space<vmem>>, vector<8x256xf32>
    %cst = arith.constant 9.99999997E-7 : f32
    %3 = vector.broadcast %cst : f32 to vector<8x256xf32>
    %4 = arith.maximumf %2, %3 : vector<8x256xf32>
    %5 = math.log %4 : vector<8x256xf32>
    %6 = vector.broadcast %0 : f32 to vector<8x256xf32>
    %7 = arith.mulf %6, %5 : vector<8x256xf32>
    %8 = math.exp %7 : vector<8x256xf32>
    %cst_2 = arith.constant dense<0.000000e+00> : vector<8xf32>
    %9 = vector.multi_reduction <add>, %8, %cst_2 [1] : vector<8x256xf32> to vector<8xf32>
    %10 = vector.shape_cast %9 : vector<8xf32> to vector<8x1xf32>
    %cst_3 = arith.constant 2.560000e+02 : f32
    %11 = vector.broadcast %cst_3 : f32 to vector<8x1xf32>
    %12 = arith.divf %10, %11 : vector<8x1xf32>
    %13 = math.log %12 : vector<8x1xf32>
    %14 = vector.broadcast %1 : f32 to vector<8x1xf32>
    %15 = arith.mulf %13, %14 : vector<8x1xf32>
    %16 = math.exp %15 : vector<8x1xf32>
    %c0_4 = arith.constant 0 : index
    %c0_5 = arith.constant 0 : index
    %17 = vector.load %arg3[%c0_4, %c0_5] : memref<8x1xf32, #tpu.memory_space<vmem>>, vector<8x1xf32>
    tpu.vector_store %arg3[%c0_4, %c0_5], %16 {strides = array<i32>} : memref<8x1xf32, #tpu.memory_space<vmem>>, vector<8x1xf32>,
    return
  }
  func.func @transform_0(%arg0: i32) -> i32 {
    %c0_i32 = arith.constant 0 : i32
    %c0_i32_0 = arith.constant 0 : i32
    return %c0_i32 : i32
  }
  func.func @transform_1(%arg0: i32) -> (i32, i32) {
    %c0_i32 = arith.constant 0 : i32
    %c0_i32_0 = arith.constant 0 : i32
    return %arg0, %c0_i32 : i32, i32
  }
  func.func @transform_2(%arg0: i32) -> (i32, i32) {
    %c0_i32 = arith.constant 0 : i32
    %c0_i32_0 = arith.constant 0 : i32
    return %arg0, %c0_i32 : i32, i32
  }
}

</mosaic_0001>

<bundles_post_ra>
// kernel: tpu_custom_call.1
= control target key start
LH: loop header
LB: loop body
LE: loop exit
PB: predicated region body
PF: predicated region fallthrough
CT: control target
= control target key end

     0   :  { %7 = vsyncpa [#allocation4], 0  ;;  %s143_s0 = inlined_call_operand.hbm [shape: f32[2], index: 0, kind: input, shape index: {}]   ;;  %s144_s1 = inlined_call_operand.hbm [shape: f32[8,256], index: 1, kind: input, shape index: {}]   ;;  %s145_s2 = inlined_call_operand.vmem [shape: f32[8,1], index: 2, kind: output, shape index: {}]  }
   0x1   :  { %8 = vsyncpa [#allocation3], 0  ;;  %s117_s9 = smov [#allocation2]   ;;  %s118_s12 = smov [#allocation5]  }
   0x2   :  { %16 = dma.hbm_to_smem %s143_s0, 16, %s117_s9, [#allocation4]  }
   0x3   :  { %s23_s13 = sshll.u32 %s118_s12, 4  ;;  %s24_s13 = int_to_ptr.vmem [resolvable:$true] %s23_s13 }
   0x4   :  { %s101_s14 = scalar_lea.vmem %s24_s13, 256  ;;  %p106_p1 = scmp.lt.s32.totalorder %s24_s13, %s24_s13 }
   0x5   :  { %p102_p0 = scmp.ne.s32.totalorder %s24_s13, %s101_s14  ;;  %p107_p2 = scmp.lt.s32.totalorder %s101_s14, %s101_s14 }
   0x7   :  { %p108_p3 = por %p107_p2, %p106_p1 }
   0x9   :  { %p109_p4 = pnand %p108_p3, %p102_p0 }
   0xb   :  { %112 = shalt.err (!%p109_p4)
}
   0xc   :  { %26 = dma.hbm_to_vmem [thread:$0]  %s144_s1, 256, %s24_s13, [#allocation3]  }
   0xd   :  { %113 = dma.done.wait [#allocation4], 16  }
   0xe   :  { %114 = vsyncadd [#allocation4], 4294967280 }
   0xf   :  { %115 = dma.done.wait [#allocation3], 256  }
  0x10   :  { %116 = vsyncadd [#allocation3], 4294967040 }
  0x11   :  { %33 = sfence }
  0x12   :  { %v36_v0 = vld [vmem:[#allocation5] sm:$0xff]  ;;  %v37_v1 = vld [vmem:[#allocation5 + $0x8] sm:$0xff]  ;;  %s34_s0 = sld [smem:[#allocation2]]  ;;  %vm62_vm0 = vcmask 7168  }
  0x13   :  { %v38_v2 = vmax.f32 %v36_v0, 1e-06  ;;  %v39_v3 = vmax.f32 %v37_v1, 1e-06  ;;  %s70_s1 = sld [smem:[#allocation2 + $0x1]] }
  0x15   :  { %73 = vlog2.f32 %v38_v2 }
  0x16   :  { %75 = vlog2.f32 %v39_v3 }
  0x18   :  { %v44_v5 = vstv %s34_s0 }
  0x19   :  { %v58_v19 = vstv %s70_s1 }
  0x22   :  { %v74_v4 = vpop.eup %73 }
  0x23   :  { %v76_v6 = vpop.eup %75  ;;  %v41_v7 = vmul.f32 0.6931472, %v74_v4 }
  0x24   :  { %v43_v8 = vmul.f32 0.6931472, %v76_v6 }
  0x25   :  { %v45_v9 = vmul.f32 %v44_v5, %v41_v7 }
  0x26   :  { %v46_v10 = vmul.f32 %v44_v5, %v43_v8 }
  0x27   :  { %v47_v11 = vmul.f32 1.442695, %v45_v9 }
  0x28   :  { %v49_v12 = vmul.f32 1.442695, %v46_v10 }
  0x29   :  { %77 = vpow2.f32 %v47_v11 }
  0x2a   :  { %79 = vpow2.f32 %v49_v12 }
  0x36   :  { %v78_v13 = vpop.eup %77 }
  0x37   :  { %v80_v14 = vpop.eup %79 }
  0x38   :  { %v51_v15 = vadd.f32 %v80_v14, %v78_v13 }
  0x3a   :  { %52 = vadd.xlane.f32.xlu0 %v51_v15 }
  0xc3   :  { %v53_v16 = vpop.xlane.xlu0 %52 }
  0xc4   :  { %v55_v17 = vmul.f32 0.00390625, %v53_v16 }
  0xc6   :  { %81 = vlog2.f32 %v55_v17 }
  0xd3   :  { %v82_v18 = vpop.eup %81 }
  0xd4   :  { %v57_v20 = vmul.f32 0.6931472, %v82_v18 }
  0xd6   :  { %v59_v21 = vmul.f32 %v58_v19, %v57_v20 }
  0xd8   :  { %v60_v22 = vmul.f32 1.442695, %v59_v21 }
  0xda   :  { %83 = vpow2.f32 %v60_v22 }
  0xe7   :  { %v84_v23 = vpop.eup %83 }
  0xe8   :  { %63 = vst.msk [vmem:[%s145_s2] sm:$0xff] %vm62_vm0, %v84_v23 }
  0xe9   :  { %68 = vsyncpa [#allocation3], 1 }
  0xea   :  { %69 = vsyncpa [#allocation4], 1 }

</bundles_post_ra>
